<compile_context>
chip_gen: v5e
topology: v5e:2x2
jax: 0.10.0
libtpu: 0.0.40
codegen_flags: <defaults>
</compile_context>

<pallas_src>
import math

import numpy as np

import jax
import jax.numpy as jnp
from jax.experimental import pallas as pl
from jax.experimental.pallas import tpu as pltpu

NC = 3
NDF = 8
NGF = 8
IMAGE_SIZE = 16
BATCH = 2
N_LABLES = [5]
LRELU_SLOPE = 0.2
BN_EPS = 1e-5
KSIZE = 4  # every conv in _netD is 4x4


def _conv_out(size, k, stride, pad):
    return (size + 2 * pad - k) // stride + 1


# ---------------------------------------------------------------------------
# Host-side constant construction (trace-time only)
# ---------------------------------------------------------------------------
def _make_gather_T(batch, h, w, k, stride, pad, cols_pad=None):
    """Stacked 0/1 right-gather matrix G of shape (batch*h*w, k*k*Mp).

    For an activation stored channel-major actT (C, batch*h*w):
        (actT @ G)[c, t*Mp + m] = actT[c, idx(b, stride*oh + i - pad,
                                               stride*ow + j - pad)]
    with tap t = i*k + j and output position m = (b*Ho + oh)*Wo + ow; columns
    that read zero padding (or m >= Mo when Mo is padded to Mp) are all-zero.
    0/1 values are exact in bf16, so the gather is lossless.
    """
    ho = _conv_out(h, k, stride, pad)
    wo = _conv_out(w, k, stride, pad)
    mo = batch * ho * wo
    mp = mo if cols_pad is None else cols_pad
    npix = batch * h * w
    g = np.zeros((npix, k * k * mp), np.float32)
    for i in range(k):
        for j in range(k):
            t = i * k + j
            for b in range(batch):
                for oh in range(ho):
                    for ow in range(wo):
                        hh = stride * oh + i - pad
                        ww = stride * ow + j - pad
                        if 0 <= hh < h and 0 <= ww < w:
                            p = (b * h + hh) * w + ww
                            g[p, t * mp + (b * ho + oh) * wo + ow] = 1.0
    return jnp.asarray(g, jnp.bfloat16), mp


def _pack_w_T(w_oihw):
    """PyTorch Conv2d weight (Cout, Cin, kh, kw) -> (Cout, kh*kw*Cin), columns
    ordered (i, j, c) to match the in-kernel tap/channel patch stacking."""
    cout, cin, kh, kw = w_oihw.shape
    return jnp.transpose(w_oihw, (0, 2, 3, 1)).reshape(cout, kh * kw * cin)


def _im2col_T(x_nchw, k, stride, pad):
    """XLA-side im2col for layer 1 only: NCHW -> patchesT (k*k*C, B*Ho*Wo),
    rows ordered (i, j, c), columns ordered (b, oh, ow)."""
    bsz, cch, hh, ww = x_nchw.shape
    xp = jnp.pad(x_nchw, ((0, 0), (0, 0), (pad, pad), (pad, pad)))
    ho = _conv_out(hh, k, stride, pad)
    wo = _conv_out(ww, k, stride, pad)
    ridx = (jnp.arange(ho) * stride)[:, None] + jnp.arange(k)[None, :]   # (Ho, k)
    cidx = (jnp.arange(wo) * stride)[:, None] + jnp.arange(k)[None, :]   # (Wo, k)
    patches = xp[:, :, ridx[:, None, :, None], cidx[None, :, None, :]]
    # patches: (B, C, Ho, Wo, k, k)
    pt = jnp.transpose(patches, (4, 5, 1, 0, 2, 3))        # (k, k, C, B, Ho, Wo)
    return pt.reshape(k * k * cch, bsz * ho * wo)


# ---------------------------------------------------------------------------
# Parameter construction (deterministic DCGAN-style init; PyTorch layouts)
# ---------------------------------------------------------------------------
def init_params(key, image_size, n_lables):
    n = int(math.log2(image_size))
    assert 2 ** n == image_size and n >= 3
    params = {}
    keys = iter(jax.random.split(key, 16))

    # input-conv: Conv2d(nc, ndf, 4, 2, 1, bias=False)
    params["w_in"] = 0.02 * jax.random.normal(next(keys), (NDF, NC, 4, 4), jnp.float32)

    # pyramid stages: Conv2d + BatchNorm2d + LeakyReLU
    params["pyramid"] = []
    for i in range(n - 3):
        cin = NDF * 2 ** i
        cout = NDF * 2 ** (i + 1)
        w = 0.02 * jax.random.normal(next(keys), (cout, cin, 4, 4), jnp.float32)
        gamma = jnp.ones((cout,), jnp.float32)    # BatchNorm2d default weight
        beta = jnp.zeros((cout,), jnp.float32)    # BatchNorm2d default bias
        params["pyramid"].append((w, gamma, beta))

    c_top = NDF * 2 ** (n - 3)
    # cov_out_fake_real: Conv2d(c_top, 1, 4, 1, 0, bias=False)
    params["w_fr"] = 0.02 * jax.random.normal(next(keys), (1, c_top, 4, 4), jnp.float32)
    # cov_out_labels: Conv2d(c_top, l, 4, 1, 0, bias=False) per label head
    params["w_labels"] = [
        0.02 * jax.random.normal(next(keys), (l, c_top, 4, 4), jnp.float32)
        for l in n_lables
    ]
    return params


# ---------------------------------------------------------------------------
# Fused forward builder
# ---------------------------------------------------------------------------
def build_netd_forward(params, image_size, n_lables, batch):
    n = int(math.log2(image_size))
    assert 2 ** n == image_size and n >= 3

    n_heads_out = 1 + sum(n_lables)
    head_cols = max(8, batch)                 # pad head lanes up to 8
    ntaps = KSIZE * KSIZE

    plan = []      # static per-layer metadata baked into the kernel body
    consts = []    # kernel operands, in the exact order the kernel reads them

    h = image_size
    cin = NC

    # input-conv (nc -> ndf, 4x4, s2, p1) + LeakyReLU(0.2).  im2col happens in
    # the XLA wrapper, so this layer is ONE in-kernel GEMM.
    ho = _conv_out(h, KSIZE, 2, 1)
    plan.append(dict(kind="in_conv"))
    consts.append(_pack_w_T(params["w_in"]).astype(jnp.bfloat16))
    h, cin = ho, NDF

    # pyramid: conv -> BatchNorm (batch stats) -> LeakyReLU, fully fused
    for (w, gamma, beta) in params["pyramid"]:
        cout = w.shape[0]
        ho = _conv_out(h, KSIZE, 2, 1)
        g, mp = _make_gather_T(batch, h, h, KSIZE, 2, 1)
        plan.append(dict(kind="conv_bn_lrelu", mo=mp, cout=cout))
        consts += [
            g,                                                  # (B*h*h, 16*Mo) bf16
            _pack_w_T(w).astype(jnp.bfloat16),                  # (cout, 16*cin) bf16
            gamma.reshape(cout, 1).astype(jnp.float32),
            beta.reshape(cout, 1).astype(jnp.float32),
        ]
        h, cin = ho, cout

    # heads: fake/real conv and all label convs share ONE GEMM
    assert h == 4  # 4x4 conv, stride 1, pad 0 -> 1x1 spatial
    w_heads = jnp.concatenate([params["w_fr"]] + list(params["w_labels"]), axis=0)
    g3, mp3 = _make_gather_T(batch, h, h, KSIZE, 1, 0, cols_pad=head_cols)
    plan.append(dict(kind="head", mo=mp3, cout=n_heads_out))
    consts += [g3, _pack_w_T(w_heads).astype(jnp.bfloat16)]

    # Scaling guard (v7x: 64 MiB VMEM, 32 MiB default scoped): gather constants
    # grow ~B^2*H^4.  If this trips, move to an M-tiled grid (mark that axis
    # "parallel" so v7x's two TensorCores split it) with per-batch
    # block-diagonal gathers instead of one fused block.
    const_bytes = sum(int(np.prod(c.shape)) * c.dtype.itemsize for c in consts)
    assert const_bytes < 16 * 1024 * 1024, (
        "gather/weight constants too large for a single fused VMEM-resident "
        "kernel; re-tile over the M axis")

    # ----------------------------- fused kernel ----------------------------
    def kernel(*refs):
        o_ref = refs[-1]
        act = refs[0][...]                       # (16*NC, M1) bf16 layer-1 patchesT
        ri = 1
        for layer in plan:
            if layer["kind"] == "in_conv":
                w_ref = refs[ri]
                ri += 1
                # (ndf, 48) @ (48, M1) -> (ndf, M1): lane-dense (M1 = 128)
                y = jnp.dot(w_ref[...], act, preferred_element_type=jnp.float32)
                y = jnp.where(y > 0.0, y, LRELU_SLOPE * y)        # LeakyReLU(0.2)
                act = y.astype(jnp.bfloat16)
                continue

            g_ref, w_ref = refs[ri], refs[ri + 1]
            mo = layer["mo"]
            # GEMM 1: stacked 0/1 gather = in-kernel im2col over all 16 taps
            #   (cin, M_in) @ (M_in, 16*mo) -> (cin, 16*mo), exact in bf16
            z = jnp.dot(act, g_ref[...], preferred_element_type=jnp.float32)
            # restack tap column-blocks onto rows -> patchesT (16*cin, mo);
            # static lane slices + tile-aligned sublane concat (no reshape)
            patches = jnp.concatenate(
                [z[:, t * mo:(t + 1) * mo] for t in range(ntaps)],
                axis=0).astype(jnp.bfloat16)
            # GEMM 2: long-K weight contraction over the joint (tap, cin) axis
            y = jnp.dot(w_ref[...], patches, preferred_element_type=jnp.float32)

            if layer["kind"] == "conv_bn_lrelu":
                gamma_ref, beta_ref = refs[ri + 2], refs[ri + 3]
                ri += 4
                # BatchNorm2d, training mode: biased batch stats over B*H*W
                mu = jnp.mean(y, axis=1, keepdims=True)
                var = jnp.mean(jnp.square(y - mu), axis=1, keepdims=True)
                y = (y - mu) * jax.lax.rsqrt(var + BN_EPS)
                y = y * gamma_ref[...] + beta_ref[...]
                y = jnp.where(y > 0.0, y, LRELU_SLOPE * y)        # LeakyReLU(0.2)
                act = y.astype(jnp.bfloat16)                       # bf16 feeds next MXU
            else:  # head
                ri += 2
                # numerically stable sigmoid on row 0 (fake/real) only; label
                # rows pass through raw, exactly as in the PyTorch module.
                ez = jnp.exp(-jnp.abs(y))
                sig = jnp.where(y >= 0.0, 1.0, ez) / (1.0 + ez)
                row = jax.lax.broadcasted_iota(jnp.int32, y.shape, 0)
                o_ref[...] = jnp.where(row == 0, sig, y)

    fused_call = pl.pallas_call(
        kernel,
        out_shape=jax.ShapeDtypeStruct((n_heads_out, head_cols), jnp.float32),
        in_specs=[pl.BlockSpec(memory_space=pltpu.MemorySpace.VMEM)
                  for _ in range(1 + len(consts))],
        out_specs=pl.BlockSpec(memory_space=pltpu.MemorySpace.VMEM),
    )

    label_sizes = tuple(n_lables)

    def forward(x_nchw):
        # Only per-forward XLA glue: layer-1 im2col + bf16 cast (this removed
        # the ~2 MiB layer-1 selection matrix from the kernel's HBM traffic).
        p1t = _im2col_T(x_nchw, KSIZE, 2, 1).astype(jnp.bfloat16)
        out = fused_call(p1t, *consts)            # (1 + sum(labels), head_cols) f32
        out = out[:, :batch].T                    # (batch, 1 + sum(labels))
        out_fake_real = out[:, 0:1]               # sigmoid(fake/real), (B, 1)
        labels_out = []
        off = 1
        for l in label_sizes:
            labels_out.append(out[:, off:off + l])   # view(-1, l) equivalent
            off += l
        return out_fake_real, labels_out

    return forward


# ---------------------------------------------------------------------------
# Pure-JAX f32 reference (for a tolerance check against the fused kernel)
# ---------------------------------------------------------------------------
def _reference_forward(params, x, n_lables):
    def conv(h, w, stride, pad):
        return jax.lax.conv_general_dilated(
            h, w, (stride, stride), ((pad, pad), (pad, pad)),
            dimension_numbers=("NCHW", "OIHW", "NCHW"))

    y = conv(x, params["w_in"], 2, 1)
    y = jnp.where(y > 0.0, y, LRELU_SLOPE * y)
    for (w, gamma, beta) in params["pyramid"]:
        y = conv(y, w, 2, 1)
        mu = jnp.mean(y, axis=(0, 2, 3), keepdims=True)
        var = jnp.mean(jnp.square(y - mu), axis=(0, 2, 3), keepdims=True)
        y = (y - mu) / jnp.sqrt(var + BN_EPS)
        y = y * gamma.reshape(1, -1, 1, 1) + beta.reshape(1, -1, 1, 1)
        y = jnp.where(y > 0.0, y, LRELU_SLOPE * y)
    fr = jax.nn.sigmoid(conv(y, params["w_fr"], 1, 0)).reshape(-1, 1)
    labels = [conv(y, wl, 1, 0).reshape(-1, l)
              for wl, l in zip(params["w_labels"], n_lables)]
    return fr, labels


# ---------------------------------------------------------------------------
if __name__ == "__main__":
    key = jax.random.PRNGKey(0)
    k_params, k_input = jax.random.split(key)

    params = init_params(k_params, IMAGE_SIZE, N_LABLES)
    x = jax.random.normal(k_input, (BATCH, NC, IMAGE_SIZE, IMAGE_SIZE), jnp.float32)

    forward = jax.jit(build_netd_forward(params, IMAGE_SIZE, N_LABLES, BATCH))
    out_fake_real, labels_out = forward(x)

    out_fake_real = jax.block_until_ready(out_fake_real)
    labels_out = [jax.block_until_ready(l) for l in labels_out]

    assert out_fake_real.shape == (BATCH, 1)
    assert labels_out[0].shape == (BATCH, N_LABLES[0])
    assert bool(jnp.all(jnp.isfinite(out_fake_real)))
    assert bool(jnp.all((out_fake_real >= 0.0) & (out_fake_real <= 1.0)))

    # Tolerance check vs. f32 pure-JAX reference (bf16 GEMM inputs in the
    # kernel give ~1e-2-level divergence; loose bound per the review).
    ref_fr, ref_labels = _reference_forward(params, x, N_LABLES)
    assert float(jnp.max(jnp.abs(out_fake_real - ref_fr))) < 5e-2
    assert float(jnp.max(jnp.abs(labels_out[0] - ref_labels[0]))) < 5e-2

    print("KERNEL_OK")
</pallas_src>

<mosaic_0001>
module attributes {stable_mosaic.version = 11 : i64} {
  func.func @kernel(%arg0: memref<48x128xbf16, #tpu.memory_space<vmem>>, %arg1: memref<8x48xbf16, #tpu.memory_space<vmem>>, %arg2: memref<128x512xbf16, #tpu.memory_space<vmem>>, %arg3: memref<16x128xbf16, #tpu.memory_space<vmem>>, %arg4: memref<16x1xf32, #tpu.memory_space<vmem>>, %arg5: memref<16x1xf32, #tpu.memory_space<vmem>>, %arg6: memref<32x128xbf16, #tpu.memory_space<vmem>>, %arg7: memref<6x256xbf16, #tpu.memory_space<vmem>>, %arg8: memref<6x8xf32, #tpu.memory_space<vmem>>) attributes {dimension_semantics = [], scalar_prefetch = 0 : i64, scratch_operands = 0 : i64, tpu.core_type = #tpu.core_type<tc>} {
    %c0 = arith.constant 0 : index
    %c0_0 = arith.constant 0 : index
    %0 = vector.load %arg0[%c0, %c0_0] : memref<48x128xbf16, #tpu.memory_space<vmem>>, vector<48x128xbf16>
    %c0_1 = arith.constant 0 : index
    %c0_2 = arith.constant 0 : index
    %1 = vector.load %arg1[%c0_1, %c0_2] : memref<8x48xbf16, #tpu.memory_space<vmem>>, vector<8x48xbf16>
    %cst = arith.constant dense<0.000000e+00> : vector<8x128xf32>
    %2 = tpu.matmul %1, %0, %cst {dimension_numbers = #tpu.dot_dimension_numbers<[1], [0], [0], [1], [0, 0, 1, 1], [], []>} : vector<8x48xbf16>, vector<48x128xbf16>, vector<8x128xf32> -> vector<8x128xf32>
    %cst_3 = arith.constant 0.000000e+00 : f32
    %3 = vector.broadcast %cst_3 : f32 to vector<8x128xf32>
    %4 = arith.cmpf ogt, %2, %3 : vector<8x128xf32>
    %cst_4 = arith.constant 2.000000e-01 : f32
    %5 = vector.broadcast %cst_4 : f32 to vector<8x128xf32>
    %6 = arith.mulf %5, %2 : vector<8x128xf32>
    %7 = arith.select %4, %2, %6 : vector<8x128xi1>, vector<8x128xf32>
    %8 = arith.truncf %7 : vector<8x128xf32> to vector<8x128xbf16>
    %c0_5 = arith.constant 0 : index
    %c0_6 = arith.constant 0 : index
    %9 = vector.load %arg2[%c0_5, %c0_6] : memref<128x512xbf16, #tpu.memory_space<vmem>>, vector<128x512xbf16>
    %cst_7 = arith.constant dense<0.000000e+00> : vector<8x512xf32>
    %10 = tpu.matmul %8, %9, %cst_7 {dimension_numbers = #tpu.dot_dimension_numbers<[1], [0], [0], [1], [0, 0, 1, 1], [], []>} : vector<8x128xbf16>, vector<128x512xbf16>, vector<8x512xf32> -> vector<8x512xf32>
    %11 = vector.extract_strided_slice %10 {offsets = [0, 0], sizes = [8, 32], strides = [1, 1]} : vector<8x512xf32> to vector<8x32xf32>
    %12 = vector.extract_strided_slice %10 {offsets = [0, 32], sizes = [8, 32], strides = [1, 1]} : vector<8x512xf32> to vector<8x32xf32>
    %13 = vector.extract_strided_slice %10 {offsets = [0, 64], sizes = [8, 32], strides = [1, 1]} : vector<8x512xf32> to vector<8x32xf32>
    %14 = vector.extract_strided_slice %10 {offsets = [0, 96], sizes = [8, 32], strides = [1, 1]} : vector<8x512xf32> to vector<8x32xf32>
    %15 = vector.extract_strided_slice %10 {offsets = [0, 128], sizes = [8, 32], strides = [1, 1]} : vector<8x512xf32> to vector<8x32xf32>
    %16 = vector.extract_strided_slice %10 {offsets = [0, 160], sizes = [8, 32], strides = [1, 1]} : vector<8x512xf32> to vector<8x32xf32>
    %17 = vector.extract_strided_slice %10 {offsets = [0, 192], sizes = [8, 32], strides = [1, 1]} : vector<8x512xf32> to vector<8x32xf32>
    %18 = vector.extract_strided_slice %10 {offsets = [0, 224], sizes = [8, 32], strides = [1, 1]} : vector<8x512xf32> to vector<8x32xf32>
    %19 = vector.extract_strided_slice %10 {offsets = [0, 256], sizes = [8, 32], strides = [1, 1]} : vector<8x512xf32> to vector<8x32xf32>
    %20 = vector.extract_strided_slice %10 {offsets = [0, 288], sizes = [8, 32], strides = [1, 1]} : vector<8x512xf32> to vector<8x32xf32>
    %21 = vector.extract_strided_slice %10 {offsets = [0, 320], sizes = [8, 32], strides = [1, 1]} : vector<8x512xf32> to vector<8x32xf32>
    %22 = vector.extract_strided_slice %10 {offsets = [0, 352], sizes = [8, 32], strides = [1, 1]} : vector<8x512xf32> to vector<8x32xf32>
    %23 = vector.extract_strided_slice %10 {offsets = [0, 384], sizes = [8, 32], strides = [1, 1]} : vector<8x512xf32> to vector<8x32xf32>
    %24 = vector.extract_strided_slice %10 {offsets = [0, 416], sizes = [8, 32], strides = [1, 1]} : vector<8x512xf32> to vector<8x32xf32>
    %25 = vector.extract_strided_slice %10 {offsets = [0, 448], sizes = [8, 32], strides = [1, 1]} : vector<8x512xf32> to vector<8x32xf32>
    %26 = vector.extract_strided_slice %10 {offsets = [0, 480], sizes = [8, 32], strides = [1, 1]} : vector<8x512xf32> to vector<8x32xf32>
    %27 = tpu.concatenate %11, %12, %13, %14, %15, %16, %17, %18, %19, %20, %21, %22, %23, %24, %25, %26 in 0 : vector<8x32xf32>, vector<8x32xf32>, vector<8x32xf32>, vector<8x32xf32>, vector<8x32xf32>, vector<8x32xf32>, vector<8x32xf32>, vector<8x32xf32>, vector<8x32xf32>, vector<8x32xf32>, vector<8x32xf32>, vector<8x32xf32>, vector<8x32xf32>, vector<8x32xf32>, vector<8x32xf32>, vector<8x32xf32> -> vector<128x32xf32>
    %28 = arith.truncf %27 : vector<128x32xf32> to vector<128x32xbf16>
    %c0_8 = arith.constant 0 : index
    %c0_9 = arith.constant 0 : index
    %29 = vector.load %arg3[%c0_8, %c0_9] : memref<16x128xbf16, #tpu.memory_space<vmem>>, vector<16x128xbf16>
    %cst_10 = arith.constant dense<0.000000e+00> : vector<16x32xf32>
    %30 = tpu.matmul %29, %28, %cst_10 {dimension_numbers = #tpu.dot_dimension_numbers<[1], [0], [0], [1], [0, 0, 1, 1], [], []>} : vector<16x128xbf16>, vector<128x32xbf16>, vector<16x32xf32> -> vector<16x32xf32>
    %cst_11 = arith.constant dense<0.000000e+00> : vector<16xf32>
    %31 = vector.multi_reduction <add>, %30, %cst_11 [1] : vector<16x32xf32> to vector<16xf32>
    %32 = vector.shape_cast %31 : vector<16xf32> to vector<16x1xf32>
    %cst_12 = arith.constant 3.200000e+01 : f32
    %33 = vector.broadcast %cst_12 : f32 to vector<16x1xf32>
    %34 = arith.divf %32, %33 : vector<16x1xf32>
    %35 = vector.broadcast %34 : vector<16x1xf32> to vector<16x32xf32>
    %36 = arith.subf %30, %35 : vector<16x32xf32>
    %37 = arith.mulf %36, %36 : vector<16x32xf32>
    %cst_13 = arith.constant dense<0.000000e+00> : vector<16xf32>
    %38 = vector.multi_reduction <add>, %37, %cst_13 [1] : vector<16x32xf32> to vector<16xf32>
    %39 = vector.shape_cast %38 : vector<16xf32> to vector<16x1xf32>
    %cst_14 = arith.constant 3.200000e+01 : f32
    %40 = vector.broadcast %cst_14 : f32 to vector<16x1xf32>
    %41 = arith.divf %39, %40 : vector<16x1xf32>
    %42 = vector.broadcast %34 : vector<16x1xf32> to vector<16x32xf32>
    %43 = arith.subf %30, %42 : vector<16x32xf32>
    %cst_15 = arith.constant 9.99999974E-6 : f32
    %44 = vector.broadcast %cst_15 : f32 to vector<16x1xf32>
    %45 = arith.addf %41, %44 : vector<16x1xf32>
    %46 = math.rsqrt %45 : vector<16x1xf32>
    %47 = vector.broadcast %46 : vector<16x1xf32> to vector<16x32xf32>
    %48 = arith.mulf %43, %47 : vector<16x32xf32>
    %c0_16 = arith.constant 0 : index
    %c0_17 = arith.constant 0 : index
    %49 = vector.load %arg4[%c0_16, %c0_17] : memref<16x1xf32, #tpu.memory_space<vmem>>, vector<16x1xf32>
    %50 = vector.broadcast %49 : vector<16x1xf32> to vector<16x32xf32>
    %51 = arith.mulf %48, %50 : vector<16x32xf32>
    %c0_18 = arith.constant 0 : index
    %c0_19 = arith.constant 0 : index
    %52 = vector.load %arg5[%c0_18, %c0_19] : memref<16x1xf32, #tpu.memory_space<vmem>>, vector<16x1xf32>
    %53 = vector.broadcast %52 : vector<16x1xf32> to vector<16x32xf32>
    %54 = arith.addf %51, %53 : vector<16x32xf32>
    %cst_20 = arith.constant 0.000000e+00 : f32
    %55 = vector.broadcast %cst_20 : f32 to vector<16x32xf32>
    %56 = arith.cmpf ogt, %54, %55 : vector<16x32xf32>
    %cst_21 = arith.constant 2.000000e-01 : f32
    %57 = vector.broadcast %cst_21 : f32 to vector<16x32xf32>
    %58 = arith.mulf %57, %54 : vector<16x32xf32>
    %59 = arith.select %56, %54, %58 : vector<16x32xi1>, vector<16x32xf32>
    %60 = arith.truncf %59 : vector<16x32xf32> to vector<16x32xbf16>
    %c0_22 = arith.constant 0 : index
    %c0_23 = arith.constant 0 : index
    %61 = vector.load %arg6[%c0_22, %c0_23] : memref<32x128xbf16, #tpu.memory_space<vmem>>, vector<32x128xbf16>
    %cst_24 = arith.constant dense<0.000000e+00> : vector<16x128xf32>
    %62 = tpu.matmul %60, %61, %cst_24 {dimension_numbers = #tpu.dot_dimension_numbers<[1], [0], [0], [1], [0, 0, 1, 1], [], []>} : vector<16x32xbf16>, vector<32x128xbf16>, vector<16x128xf32> -> vector<16x128xf32>
    %63 = vector.extract_strided_slice %62 {offsets = [0, 0], sizes = [16, 8], strides = [1, 1]} : vector<16x128xf32> to vector<16x8xf32>
    %64 = vector.extract_strided_slice %62 {offsets = [0, 8], sizes = [16, 8], strides = [1, 1]} : vector<16x128xf32> to vector<16x8xf32>
    %65 = vector.extract_strided_slice %62 {offsets = [0, 16], sizes = [16, 8], strides = [1, 1]} : vector<16x128xf32> to vector<16x8xf32>
    %66 = vector.extract_strided_slice %62 {offsets = [0, 24], sizes = [16, 8], strides = [1, 1]} : vector<16x128xf32> to vector<16x8xf32>
    %67 = vector.extract_strided_slice %62 {offsets = [0, 32], sizes = [16, 8], strides = [1, 1]} : vector<16x128xf32> to vector<16x8xf32>
    %68 = vector.extract_strided_slice %62 {offsets = [0, 40], sizes = [16, 8], strides = [1, 1]} : vector<16x128xf32> to vector<16x8xf32>
    %69 = vector.extract_strided_slice %62 {offsets = [0, 48], sizes = [16, 8], strides = [1, 1]} : vector<16x128xf32> to vector<16x8xf32>
    %70 = vector.extract_strided_slice %62 {offsets = [0, 56], sizes = [16, 8], strides = [1, 1]} : vector<16x128xf32> to vector<16x8xf32>
    %71 = vector.extract_strided_slice %62 {offsets = [0, 64], sizes = [16, 8], strides = [1, 1]} : vector<16x128xf32> to vector<16x8xf32>
    %72 = vector.extract_strided_slice %62 {offsets = [0, 72], sizes = [16, 8], strides = [1, 1]} : vector<16x128xf32> to vector<16x8xf32>
    %73 = vector.extract_strided_slice %62 {offsets = [0, 80], sizes = [16, 8], strides = [1, 1]} : vector<16x128xf32> to vector<16x8xf32>
    %74 = vector.extract_strided_slice %62 {offsets = [0, 88], sizes = [16, 8], strides = [1, 1]} : vector<16x128xf32> to vector<16x8xf32>
    %75 = vector.extract_strided_slice %62 {offsets = [0, 96], sizes = [16, 8], strides = [1, 1]} : vector<16x128xf32> to vector<16x8xf32>
    %76 = vector.extract_strided_slice %62 {offsets = [0, 104], sizes = [16, 8], strides = [1, 1]} : vector<16x128xf32> to vector<16x8xf32>
    %77 = vector.extract_strided_slice %62 {offsets = [0, 112], sizes = [16, 8], strides = [1, 1]} : vector<16x128xf32> to vector<16x8xf32>
    %78 = vector.extract_strided_slice %62 {offsets = [0, 120], sizes = [16, 8], strides = [1, 1]} : vector<16x128xf32> to vector<16x8xf32>
    %79 = tpu.concatenate %63, %64, %65, %66, %67, %68, %69, %70, %71, %72, %73, %74, %75, %76, %77, %78 in 0 : vector<16x8xf32>, vector<16x8xf32>, vector<16x8xf32>, vector<16x8xf32>, vector<16x8xf32>, vector<16x8xf32>, vector<16x8xf32>, vector<16x8xf32>, vector<16x8xf32>, vector<16x8xf32>, vector<16x8xf32>, vector<16x8xf32>, vector<16x8xf32>, vector<16x8xf32>, vector<16x8xf32>, vector<16x8xf32> -> vector<256x8xf32>
    %80 = arith.truncf %79 : vector<256x8xf32> to vector<256x8xbf16>
    %c0_25 = arith.constant 0 : index
    %c0_26 = arith.constant 0 : index
    %81 = vector.load %arg7[%c0_25, %c0_26] : memref<6x256xbf16, #tpu.memory_space<vmem>>, vector<6x256xbf16>
    %cst_27 = arith.constant dense<0.000000e+00> : vector<6x8xf32>
    %82 = tpu.matmul %81, %80, %cst_27 {dimension_numbers = #tpu.dot_dimension_numbers<[1], [0], [0], [1], [0, 0, 1, 1], [], []>} : vector<6x256xbf16>, vector<256x8xbf16>, vector<6x8xf32> -> vector<6x8xf32>
    %83 = math.absf %82 : vector<6x8xf32>
    %cst_28 = arith.constant 0.000000e+00 : f32
    %84 = vector.broadcast %cst_28 : f32 to vector<6x8xf32>
    %85 = arith.subf %84, %83 : vector<6x8xf32>
    %86 = math.exp %85 : vector<6x8xf32>
    %cst_29 = arith.constant 0.000000e+00 : f32
    %87 = vector.broadcast %cst_29 : f32 to vector<6x8xf32>
    %88 = arith.cmpf oge, %82, %87 : vector<6x8xf32>
    %cst_30 = arith.constant 1.000000e+00 : f32
    %89 = vector.broadcast %cst_30 : f32 to vector<6x8xf32>
    %90 = arith.select %88, %89, %86 : vector<6x8xi1>, vector<6x8xf32>
    %cst_31 = arith.constant 1.000000e+00 : f32
    %91 = vector.broadcast %cst_31 : f32 to vector<6x8xf32>
    %92 = arith.addf %91, %86 : vector<6x8xf32>
    %93 = arith.divf %90, %92 : vector<6x8xf32>
    %94 = tpu.iota {dimensions = array<i32: 0>} : vector<6x8xi32>
    %c0_i32 = arith.constant 0 : i32
    %95 = vector.broadcast %c0_i32 : i32 to vector<6x8xi32>
    %96 = arith.cmpi eq, %94, %95 : vector<6x8xi32>
    %97 = arith.select %96, %93, %82 : vector<6x8xi1>, vector<6x8xf32>
    %c0_32 = arith.constant 0 : index
    %c0_33 = arith.constant 0 : index
    %98 = vector.load %arg8[%c0_32, %c0_33] : memref<6x8xf32, #tpu.memory_space<vmem>>, vector<6x8xf32>
    tpu.vector_store %arg8[%c0_32, %c0_33], %97 {strides = array<i32>} : memref<6x8xf32, #tpu.memory_space<vmem>>, vector<6x8xf32>,
    return
  }
}

</mosaic_0001>

<bundles_post_ra>
// kernel: forward.1
= control target key start
LH: loop header
LB: loop body
LE: loop exit
PB: predicated region body
PF: predicated region fallthrough
CT: control target
= control target key end

     0   :  { %vm55_vm0 = vcmask 392192   ;;  %s981_s22 = smov 96   ;;  %s983_s23 = smov 32   ;;  %vm390_vm2 = vcmask 261120   ;;  %s1305_s0 = inlined_call_operand.vmem [shape: bf16[48,128], index: 0, kind: input, shape index: {}]   ;;  %s1306_s2 = inlined_call_operand.vmem [shape: bf16[128,512], index: 2, kind: input, shape index: {}]   ;;  %s1307_s1 = inlined_call_operand.vmem [shape: bf16[8,48], index: 1, kind: input, shape index: {}]   ;;  %s1308_s3 = inlined_call_operand.vmem [shape: bf16[16,128], index: 3, kind: input, shape index: {}]   ;;  %s1309_s4 = inlined_call_operand.vmem [shape: f32[16,1], index: 4, kind: input, shape index: {}]   ;;  %s1310_s5 = inlined_call_operand.vmem [shape: f32[16,1], index: 5, kind: input, shape index: {}]   ;;  %s1311_s6 = inlined_call_operand.vmem [shape: bf16[32,128], index: 6, kind: input, shape index: {}]   ;;  %s1312_s7 = inlined_call_operand.vmem [shape: bf16[6,256], index: 7, kind: input, shape index: {}]   ;;  %s1313_s8 = inlined_call_operand.vmem [shape: f32[6,8], index: 8, kind: output, shape index: {}]  }
   0x1   :  { %v840_v0 = vld [vmem:[%s1305_s0 + $0x10] sm:$0xff]  ;;  %v811_v1 = vld [vmem:[%s1306_s2 + $0xe0] sm:$0xf]  ;;  %v839_v3 = vld [vmem:[%s1305_s0 + $0x8] sm:$0xff]  ;;  %s988_s14 = smov 72   ;;  %s989_s15 = smov 24  }
   0x2   :  { %v871_v2 = vld [vmem:[%s1306_s2 + $0xec] sm:$0xf0]  ;;  %64 = vmatpush.bf16.msra.mxu2 %v840_v0  ;;  %v869_v5 = vld [vmem:[%s1306_s2 + $0xe4] sm:$0xf]  ;;  %v819_v6 = vld [vmem:[%s1306_s2 + $0xe8] sm:$0xf] }
   0x3   :  { %v812_v4 = vor.u32 %v871_v2, %v811_v1  ;;  %v872_v7 = vld [vmem:[%s1306_s2 + $0xf4] sm:$0xf0]  ;;  %v870_v8 = vld [vmem:[%s1306_s2 + $0xec] sm:$0xf]  ;;  %v821_v9 = vld [vmem:[%s1306_s2 + $0xf8] sm:$0xf0] }
   0x4   :  { %v813_v10 = vld [vmem:[%s1306_s2 + $0xf0] sm:$0xf0]  ;;  %v820_v11 = vor.u32 %v872_v7, %v819_v6  ;;  %v824_v12 = vor.u32 %v870_v8, %v821_v9  ;;  %v795_v13 = vld [vmem:[%s1306_s2 + $0xc0] sm:$0xf]  ;;  %v867_v14 = vld [vmem:[%s1306_s2 + $0xcc] sm:$0xf0] }
   0x5   :  { %268 = vmatpush.bf16.msra.mxu1 %v812_v4  ;;  %v838_v15 = vld [vmem:[%s1305_s0] sm:$0xff]  ;;  %v796_v16 = vor.u32 %v867_v14, %v795_v13  ;;  %v803_v17 = vld [vmem:[%s1306_s2 + $0xc8] sm:$0xf]  ;;  %v868_v18 = vld [vmem:[%s1306_s2 + $0xd4] sm:$0xf0]  ;;  %v816_v23 = vor.u32 %v869_v5, %v813_v10  ;;  %s990_s16 = smov 16  }
   0x6   :  { %65 = vmatpush.bf16.msra.mxu2 %v839_v3  ;;  %294 = vmatpush.bf16.msra.mxu3 %v820_v11  ;;  %v804_v19 = vor.u32 %v868_v18, %v803_v17  ;;  %v866_v20 = vld [vmem:[%s1306_s2 + $0xcc] sm:$0xf]  ;;  %v805_v21 = vld [vmem:[%s1306_s2 + $0xd8] sm:$0xf0]  ;;  %v779_v22 = vld [vmem:[%s1306_s2 + $0xa0] sm:$0xf] }
   0x7   :  { %307 = vmatpush.bf16.msra.mxu0 %v824_v12  ;;  %v865_v24 = vld [vmem:[%s1306_s2 + $0xc4] sm:$0xf]  ;;  %v797_v25 = vld [vmem:[%s1306_s2 + $0xd0] sm:$0xf0]  ;;  %v808_v26 = vor.u32 %v866_v20, %v805_v21  ;;  %v863_v27 = vld [vmem:[%s1306_s2 + $0xac] sm:$0xf0] }
   0x8   :  { %v780_v28 = vor.u32 %v863_v27, %v779_v22  ;;  %v787_v29 = vld [vmem:[%s1306_s2 + $0xa8] sm:$0xf]  ;;  %v864_v30 = vld [vmem:[%s1306_s2 + $0xb4] sm:$0xf0]  ;;  %v862_v31 = vld [vmem:[%s1306_s2 + $0xac] sm:$0xf]  ;;  %v800_v37 = vor.u32 %v865_v24, %v797_v25 }
   0x9   :  { %269 = vmatpush.bf16.msra.mxu1 %v796_v16  ;;  %v789_v32 = vld [vmem:[%s1306_s2 + $0xb8] sm:$0xf0]  ;;  %v763_v33 = vld [vmem:[%s1306_s2 + $0x80] sm:$0xf]  ;;  %v859_v34 = vld [vmem:[%s1306_s2 + $0x8c] sm:$0xf0]  ;;  %v788_v36 = vor.u32 %v864_v30, %v787_v29 }
   0xa   :  { %66 = vmatpush.bf16.msra.mxu2 %v838_v15  ;;  %v36_v35 = vld [vmem:[%s1307_s1] sm:$0xf]  ;;  %295 = vmatpush.bf16.msra.mxu3 %v804_v19  ;;  %v861_v38 = vld [vmem:[%s1306_s2 + $0xa4] sm:$0xf]  ;;  %v792_v39 = vor.u32 %v862_v31, %v789_v32  ;;  %v771_v40 = vld [vmem:[%s1306_s2 + $0x88] sm:$0xf]  ;;  %v764_v43 = vor.u32 %v859_v34, %v763_v33 }
   0xb   :  { %308 = vmatpush.bf16.msra.mxu0 %v808_v26  ;;  %v860_v41 = vld [vmem:[%s1306_s2 + $0x94] sm:$0xf0]  ;;  %v781_v42 = vld [vmem:[%s1306_s2 + $0xb0] sm:$0xf0]  ;;  %v858_v44 = vld [vmem:[%s1306_s2 + $0x8c] sm:$0xf] }
   0xc   :  { %v773_v45 = vld [vmem:[%s1306_s2 + $0x98] sm:$0xf0]  ;;  %v747_v46 = vld [vmem:[%s1306_s2 + $0x60] sm:$0xf]  ;;  %v855_v47 = vld [vmem:[%s1306_s2 + $0x6c] sm:$0xf0]  ;;  %v772_v48 = vor.u32 %v860_v41, %v771_v40  ;;  %v784_v49 = vor.u32 %v861_v38, %v781_v42 }
   0xd   :  { %270 = vmatpush.bf16.msra.mxu1 %v780_v28  ;;  %696 = vmatmul.msk.bf16.vlgmr.msra.gmra.mxu2 %vm55_vm0, %v36_v35  ;;  %v857_v50 = vld [vmem:[%s1306_s2 + $0x84] sm:$0xf]  ;;  %v776_v51 = vor.u32 %v858_v44, %v773_v45  ;;  %v755_v52 = vld [vmem:[%s1306_s2 + $0x68] sm:$0xf]  ;;  %v856_v53 = vld [vmem:[%s1306_s2 + $0x74] sm:$0xf0]  ;;  %v748_v55 = vor.u32 %v855_v47, %v747_v46 }
   0xe   :  { %281 = vmatpush.bf16.msrb.mxu2 %v816_v23  ;;  %296 = vmatpush.bf16.msra.mxu3 %v788_v36  ;;  %v765_v54 = vld [vmem:[%s1306_s2 + $0x90] sm:$0xf0]  ;;  %v854_v56 = vld [vmem:[%s1306_s2 + $0x6c] sm:$0xf]  ;;  %v757_v57 = vld [vmem:[%s1306_s2 + $0x78] sm:$0xf0]  ;;  %v756_v60 = vor.u32 %v856_v53, %v755_v52 }
   0xf   :  { %309 = vmatpush.bf16.msra.mxu0 %v792_v39  ;;  %v731_v58 = vld [vmem:[%s1306_s2 + $0x40] sm:$0xf]  ;;  %v851_v59 = vld [vmem:[%s1306_s2 + $0x4c] sm:$0xf0]  ;;  %v768_v61 = vor.u32 %v857_v50, %v765_v54  ;;  %v853_v62 = vld [vmem:[%s1306_s2 + $0x64] sm:$0xf]  ;;  %v760_v63 = vor.u32 %v854_v56, %v757_v57 }
  0x10   :  { %v739_v0 = vld [vmem:[%s1306_s2 + $0x48] sm:$0xf]  ;;  %v852_v1 = vld [vmem:[%s1306_s2 + $0x54] sm:$0xf0]  ;;  %v749_v2 = vld [vmem:[%s1306_s2 + $0x70] sm:$0xf0]  ;;  %v732_v3 = vor.u32 %v851_v59, %v731_v58 }
  0x11   :  { %271 = vmatpush.bf16.msra.mxu1 %v764_v43  ;;  %v850_v4 = vld [vmem:[%s1306_s2 + $0x4c] sm:$0xf]  ;;  %v741_v5 = vld [vmem:[%s1306_s2 + $0x58] sm:$0xf0]  ;;  %v715_v6 = vld [vmem:[%s1306_s2 + $0x20] sm:$0xf]  ;;  %v740_v8 = vor.u32 %v852_v1, %v739_v0  ;;  %v752_v9 = vor.u32 %v853_v62, %v749_v2 }
  0x12   :  { %282 = vmatpush.bf16.msrb.mxu2 %v800_v37  ;;  %297 = vmatpush.bf16.msra.mxu3 %v772_v48  ;;  %v847_v7 = vld [vmem:[%s1306_s2 + $0x2c] sm:$0xf0]  ;;  %v849_v10 = vld [vmem:[%s1306_s2 + $0x44] sm:$0xf]  ;;  %v744_v11 = vor.u32 %v850_v4, %v741_v5  ;;  %v723_v12 = vld [vmem:[%s1306_s2 + $0x28] sm:$0xf] }
  0x13   :  { %310 = vmatpush.bf16.msra.mxu0 %v776_v51  ;;  %v848_v13 = vld [vmem:[%s1306_s2 + $0x34] sm:$0xf0]  ;;  %v733_v14 = vld [vmem:[%s1306_s2 + $0x50] sm:$0xf0]  ;;  %v716_v15 = vor.u32 %v847_v7, %v715_v6  ;;  %v846_v16 = vld [vmem:[%s1306_s2 + $0x2c] sm:$0xf] }
  0x14   :  { %v725_v17 = vld [vmem:[%s1306_s2 + $0x38] sm:$0xf0]  ;;  %v724_v18 = vor.u32 %v848_v13, %v723_v12  ;;  %v736_v19 = vor.u32 %v849_v10, %v733_v14  ;;  %v845_v21 = vld [vmem:[%s1306_s2 + $0x24] sm:$0xf]  ;;  %v717_v22 = vld [vmem:[%s1306_s2 + $0x30] sm:$0xf0] }
  0x15   :  { %272 = vmatpush.bf16.msra.mxu1 %v748_v55  ;;  %v728_v20 = vor.u32 %v846_v16, %v725_v17  ;;  %v720_v23 = vor.u32 %v845_v21, %v717_v22  ;;  %v699_v24 = vld [vmem:[%s1306_s2] sm:$0xf]  ;;  %v843_v25 = vld [vmem:[%s1306_s2 + $0xc] sm:$0xf0]  ;;  %v841_v26 = vld [vmem:[%s1306_s2 + $0x4] sm:$0xf] }
  0x16   :  { %283 = vmatpush.bf16.msrb.mxu2 %v784_v49  ;;  %298 = vmatpush.bf16.msra.mxu3 %v756_v60  ;;  %v700_v27 = vor.u32 %v843_v25, %v699_v24  ;;  %v701_v28 = vld [vmem:[%s1306_s2 + $0x10] sm:$0xf0]  ;;  %v707_v29 = vld [vmem:[%s1306_s2 + $0x8] sm:$0xf]  ;;  %v844_v30 = vld [vmem:[%s1306_s2 + $0x14] sm:$0xf0] }
  0x17   :  { %311 = vmatpush.bf16.msra.mxu0 %v760_v63  ;;  %v704_v31 = vor.u32 %v841_v26, %v701_v28  ;;  %v708_v32 = vor.u32 %v844_v30, %v707_v29  ;;  %v842_v33 = vld [vmem:[%s1306_s2 + $0xc] sm:$0xf]  ;;  %v709_v34 = vld [vmem:[%s1306_s2 + $0x18] sm:$0xf0]  ;;  %s982_s2 = smov 64   ;;  %v873_v5 = vld [vmem:[%s1308_s3] sm:$0xff] }
  0x18   :  { %v712_v35 = vor.u32 %v842_v33, %v709_v34  ;;  %v984_v10 = vmov 32.0   ;;  %v443_v13 = vld [vmem:[%s1309_s4 + $0x8] sm:$0xff]  ;;  %v442_v14 = vld [vmem:[%s1309_s4] sm:$0xff]  ;;  %s991_s0 = smov 8   ;;  %s992_s17 = smov 112  }
  0x19   :  { %273 = vmatpush.bf16.msra.mxu1 %v732_v3  ;;  %971 = vrcp.f32 %v984_v10  ;;  %v875_v34 = vld [vmem:[%s1311_s6 + $0x8] sm:$0xff]  ;;  %s993_s18 = smov 104   ;;  %s994_s19 = smov 48  }
  0x1a   :  { %284 = vmatpush.bf16.msrb.mxu2 %v768_v61  ;;  %299 = vmatpush.bf16.msra.mxu3 %v740_v8  ;;  %s995_s20 = smov 40   ;;  %s996_s1 = smov 56  }
  0x1b   :  { %312 = vmatpush.bf16.msra.mxu0 %v744_v11  ;;  %s997_s21 = smov 120  }
  0x1d   :  { %274 = vmatpush.bf16.msra.mxu1 %v716_v15  ;;  %v985_v15 = vmov 0  }
  0x1e   :  { %285 = vmatpush.bf16.msrb.mxu2 %v752_v9  ;;  %300 = vmatpush.bf16.msra.mxu3 %v724_v18  ;;  %v457_v18 = vld [vmem:[%s1310_s5 + $0x8] sm:$0xff] }
  0x1f   :  { %313 = vmatpush.bf16.msra.mxu0 %v728_v20  ;;  %v972_v11 = vpop.eup %971  ;;  %894 = vset.pattern.permute.xlu1 %v985_v15 }
  0x20   :  { %v398_v12 = vmul.f32 32.0, %v972_v11  ;;  %893 = vset.pattern.permute.xlu0 %v985_v15  ;;  %895 = vset.pattern.permute.xlu2 %v985_v15  ;;  %vm402_vm3 = vweird.f32 %v972_v11 }
  0x21   :  { %275 = vmatpush.bf16.msra.mxu1 %v700_v27 }
  0x22   :  { %286 = vmatpush.bf16.msrb.mxu2 %v736_v19  ;;  %301 = vmatpush.bf16.msra.mxu3 %v708_v32  ;;  %v399_v16 = vsub.f32 1.0, %v398_v12 }
  0x23   :  { %314 = vmatpush.bf16.msra.mxu0 %v712_v35 }
  0x24   :  { %v400_v17 = vmul.f32 %v972_v11, %v399_v16 }
  0x26   :  { %287 = vmatpush.bf16.msrb.mxu2 %v720_v23  ;;  %v401_v19 = vadd.f32 %v972_v11, %v400_v17 }
  0x28   :  { %v403_v20 = vsel %vm402_vm3, %v972_v11, %v401_v19 }
  0x2a   :  { %288 = vmatpush.bf16.msrb.mxu2 %v704_v31  ;;  %v456_v31 = vld [vmem:[%s1310_s5] sm:$0xff]  ;;  %s986_s5 = smov 88  }
  0x2e   :  { %502 = vmatpush.bf16.msra.mxu2 %v875_v34 }
  0x90   :  { %v68_v36 = vpop.f32.mrf.mxu2 }
  0x91   :  { %vm72_vm1 = vcmp.gt.f32.partialorder %v68_v36, 0.0  ;;  %v73_v37 = vmul.f32 0.2, %v68_v36 }
  0x93   :  { %v74_v38 = vsel %vm72_vm1, %v68_v36, %v73_v37  ;;  %v874_v36 = vld [vmem:[%s1311_s6] sm:$0xff]  ;;  %s987_s6 = smov 80  }
  0x94   :  { %v75_v39 = vpack.c.bf16 %v74_v38, %v74_v38  ;;  %503 = vmatpush.bf16.msra.mxu2 %v874_v36 }
  0x96   :  { %276 = vmatmul.bf16.vlgmr.msra.gmra.mxu1 %v75_v39  ;;  %289 = vmatmul.bf16.vlgmr.msrb.gmra.mxu2 %v75_v39 }
  0x97   :  { %302 = vmatmul.bf16.vlgmr.msra.gmra.mxu3 %v75_v39  ;;  %315 = vmatmul.bf16.vlgmr.msra.gmra.mxu0 %v75_v39 }
  0x98   :  { %v70_v40 = vpop.f32.mrf.mxu2 }
 0x113   :  { %v277_v41 = vpop.f32.mrf.mxu1 }
 0x114   :  { %v316_v42 = vpop.f32.mrf.mxu0 }
 0x115   :  { %351 = vrot.lane.b32.xlu1 %v316_v42, %s981_s22  ;;  %354 = vrot.lane.b32.xlu0 %v316_v42, %s982_s2 }
 0x119   :  { %v290_v43 = vpop.f32.mrf.mxu2 }
 0x11a   :  { %v303_v44 = vpop.f32.mrf.mxu3 }
 0x11b   :  { %347 = vrot.lane.b32.xlu2 %v303_v44, %s983_s23  ;;  %v279_v45 = vpop.f32.mrf.mxu1 }
 0x11c   :  { %v318_v46 = vpop.f32.mrf.mxu0 }
 0x11d   :  { %357 = vrot.lane.b32.xlu0 %v316_v42, %s983_s23  ;;  %344 = vrot.lane.b32.xlu1 %v303_v44, %s982_s2 }
 0x121   :  { %v292_v47 = vpop.f32.mrf.mxu2 }
 0x122   :  { %v305_v48 = vpop.f32.mrf.mxu3 }
 0x123   :  { %341 = vrot.lane.b32.xlu2 %v303_v44, %s981_s22 }
 0x125   :  { %337 = vrot.lane.b32.xlu1 %v290_v43, %s983_s23  ;;  %334 = vrot.lane.b32.xlu0 %v290_v43, %s982_s2 }
 0x12b   :  { %331 = vrot.lane.b32.xlu2 %v290_v43, %s981_s22 }
 0x12d   :  { %327 = vrot.lane.b32.xlu1 %v277_v41, %s983_s23  ;;  %324 = vrot.lane.b32.xlu0 %v277_v41, %s982_s2 }
 0x133   :  { %321 = vrot.lane.b32.xlu2 %v277_v41, %s981_s22 }
 0x175   :  { %v348_v51 = vpop.permute.xlu2 %347 }
 0x17d   :  { %v342_v56 = vpop.permute.xlu2 %341 }
 0x17e   :  { %v364_v60 = vpack.c.bf16 %v342_v56, %v303_v44 }
 0x185   :  { %v332_v61 = vpop.permute.xlu2 %331 }
 0x186   :  { %v362_v63 = vpack.c.bf16 %v332_v61, %v290_v43 }
 0x187   :  { %v352_v49 = vpop.permute.xlu1 %351  ;;  %v355_v50 = vpop.permute.xlu0 %354 }
 0x188   :  { %v366_v55 = vpack.c.bf16 %v352_v49, %v316_v42 }
 0x18d   :  { %v322_v3 = vpop.permute.xlu2 %321 }
 0x18e   :  { %v360_v4 = vpack.c.bf16 %v322_v3, %v277_v41 }
 0x18f   :  { %v358_v52 = vpop.permute.xlu0 %357  ;;  %v345_v54 = vpop.permute.xlu1 %344 }
 0x190   :  { %v367_v53 = vpack.c.bf16 %v358_v52, %v355_v50  ;;  %v365_v57 = vpack.c.bf16 %v348_v51, %v345_v54 }
 0x192   :  { %376 = vmatpush.bf16.msrb.mxu1 %v367_v53 }
 0x196   :  { %377 = vmatpush.bf16.msrb.mxu1 %v366_v55 }
 0x197   :  { %v338_v58 = vpop.permute.xlu1 %337  ;;  %v335_v59 = vpop.permute.xlu0 %334 }
 0x198   :  { %v363_v62 = vpack.c.bf16 %v338_v58, %v335_v59 }
 0x19a   :  { %378 = vmatpush.bf16.msrb.mxu1 %v365_v57 }
 0x19e   :  { %379 = vmatpush.bf16.msrb.mxu1 %v364_v60 }
 0x19f   :  { %v328_v0 = vpop.permute.xlu1 %327  ;;  %v325_v1 = vpop.permute.xlu0 %324 }
 0x1a0   :  { %v361_v2 = vpack.c.bf16 %v328_v0, %v325_v1 }
 0x1a2   :  { %380 = vmatpush.bf16.msrb.mxu1 %v363_v62 }
 0x1a6   :  { %381 = vmatpush.bf16.msrb.mxu1 %v362_v63 }
 0x1aa   :  { %382 = vmatpush.bf16.msrb.mxu1 %v361_v2 }
 0x1ae   :  { %383 = vmatpush.bf16.msrb.mxu1 %v360_v4 }
 0x1b1   :  { %384 = vmatmul.bf16.vlgmr.msrb.gmra.mxu1 %v873_v5 }
 0x22e   :  { %v385_v6 = vpop.f32.mrf.mxu1 }
 0x22f   :  { %v391_v7 = vsel %vm390_vm2, %v385_v6, 0.0 }
 0x230   :  { %392 = vadd.xlane.f32.xlu0 %v391_v7 }
 0x236   :  { %v387_v8 = vpop.f32.mrf.mxu1 }
 0x237   :  { %v394_v9 = vsel %vm390_vm2, %v387_v8, 0.0 }
 0x238   :  { %395 = vadd.xlane.f32.xlu1 %v394_v9 }
 0x244   :  { %446 = vperm.xlu0 %893, %v442_v14  }
 0x251   :  { %451 = vperm.xlu1 %894, %v443_v13  }
 0x259   :  { %465 = vperm.xlu1 %894, %v457_v18  }
 0x2a3   :  { %v393_v21 = vpop.xlane.xlu0 %392 }
 0x2a4   :  { %v404_v22 = vmul.f32 %v403_v20, %v393_v21 }
 0x2a6   :  { %v406_v23 = vsub.f32 %v385_v6, %v404_v22 }
 0x2a8   :  { %v408_v24 = vmul.f32 %v406_v23, %v406_v23 }
 0x2aa   :  { %v410_v25 = vsel %vm390_vm2, %v408_v24, 0.0 }
 0x2ab   :  { %411 = vadd.xlane.f32.xlu2 %v410_v25  ;;  %v396_v26 = vpop.xlane.xlu1 %395 }
 0x2ac   :  { %v405_v27 = vmul.f32 %v403_v20, %v396_v26 }
 0x2ae   :  { %v407_v28 = vsub.f32 %v387_v8, %v405_v27 }
 0x2b0   :  { %v409_v29 = vmul.f32 %v407_v28, %v407_v28 }
 0x2b2   :  { %v413_v30 = vsel %vm390_vm2, %v409_v29, 0.0 }
 0x2b3   :  { %414 = vadd.xlane.f32.xlu2 %v413_v30 }
 0x2b6   :  { %v447_v53 = vpop.permute.xlu0 %446 }
 0x2c3   :  { %v452_v52 = vpop.permute.xlu1 %451 }
 0x2cb   :  { %460 = vperm.xlu2 %895, %v456_v31   ;;  %v466_v62 = vpop.permute.xlu1 %465 }
 0x31e   :  { %v412_v32 = vpop.xlane.xlu2 %411 }
 0x31f   :  { %v416_v33 = vmul.f32 %v412_v32, %v403_v20 }
 0x321   :  { %v418_v35 = vadd.f32 1e-05, %v416_v33 }
 0x323   :  { %973 = vrsqrt.f32 %v418_v35  ;;  %vm426_vm5 = vweird.f32 %v418_v35 }
 0x326   :  { %v415_v37 = vpop.xlane.xlu2 %414 }
 0x327   :  { %v417_v38 = vmul.f32 %v415_v37, %v403_v20 }
 0x329   :  { %v974_v39 = vpop.eup %973  ;;  %v419_v40 = vadd.f32 1e-05, %v417_v38 }
 0x32a   :  { %v421_v41 = vmul.f32 %v974_v39, %v418_v35  ;;  %vm427_vm4 = vweird.f32 %v974_v39 }
 0x32b   :  { %975 = vrsqrt.f32 %v419_v40  ;;  %vm428_vm6 = vmor %vm426_vm5, %vm427_vm4  ;;  %vm436_vm8 = vweird.f32 %v419_v40 }
 0x32c   :  { %v422_v42 = vmul.f32 %v974_v39, %v421_v41 }
 0x32e   :  { %v423_v43 = vmul.f32 0.5, %v422_v42  ;;  %v461_v57 = vpop.permute.xlu2 %460 }
 0x330   :  { %v424_v44 = vsub.f32 1.5, %v423_v43 }
 0x331   :  { %v976_v45 = vpop.eup %975 }
 0x332   :  { %v431_v46 = vmul.f32 %v976_v45, %v419_v40  ;;  %v425_v47 = vmul.f32 %v974_v39, %v424_v44  ;;  %vm437_vm7 = vweird.f32 %v976_v45 }
 0x333   :  { %vm438_vm9 = vmor %vm436_vm8, %vm437_vm7 }
 0x334   :  { %v432_v48 = vmul.f32 %v976_v45, %v431_v46  ;;  %v429_v49 = vsel %vm428_vm6, %v974_v39, %v425_v47 }
 0x335   :  { %v440_v50 = vmul.f32 %v429_v49, %v406_v23 }
 0x336   :  { %v433_v51 = vmul.f32 0.5, %v432_v48 }
 0x337   :  { %v454_v55 = vmul.f32 %v447_v53, %v440_v50 }
 0x338   :  { %v434_v54 = vsub.f32 1.5, %v433_v51 }
 0x339   :  { %v468_v60 = vadd.f32 %v461_v57, %v454_v55 }
 0x33a   :  { %v435_v56 = vmul.f32 %v976_v45, %v434_v54 }
 0x33b   :  { %v472_v63 = vmul.f32 0.2, %v468_v60  ;;  %vm470_vm10 = vcmp.gt.f32.partialorder %v468_v60, 0.0 }
 0x33c   :  { %v439_v58 = vsel %vm438_vm9, %v976_v45, %v435_v56  ;;  %v618_v56 = vld [vmem:[%s1312_s7] sm:$0x77] }
 0x33d   :  { %v441_v59 = vmul.f32 %v439_v58, %v407_v28  ;;  %v474_v2 = vsel %vm470_vm10, %v468_v60, %v472_v63 }
 0x33f   :  { %v455_v61 = vmul.f32 %v452_v52, %v441_v59 }
 0x341   :  { %v469_v0 = vadd.f32 %v466_v62, %v455_v61  ;;  %v620_v61 = vunpack.c.l.b16 %v618_v56 }
 0x343   :  { %vm471_vm11 = vcmp.gt.f32.partialorder %v469_v0, 0.0  ;;  %v473_v1 = vmul.f32 0.2, %v469_v0 }
 0x345   :  { %v475_v3 = vsel %vm471_vm11, %v469_v0, %v473_v1  ;;  %v622_v1 = vpack.c.b16 %v620_v61, %v620_v61 }
 0x346   :  { %v476_v4 = vpack.c.bf16 %v475_v3, %v474_v2 }
 0x348   :  { %837 = vmatmul.msk.bf16.vlgmr.msra.gmra.mxu2 %vm390_vm2, %v476_v4  ;;  %vm678_vm2 = vcmask 62464  }
 0x3cb   :  { %v1285_v5 = vpop.f32.mrf.mxu2 }
 0x3d3   :  { %v1287_v6 = vpop.f32.mrf.mxu2 }
 0x3d4   :  { %v911_v7 = vpack.i.bf16 %v1287_v6, %v1285_v5  ;;  %v602_v8 = vpack.c.bf16 %v1287_v6, %v1285_v5 }
 0x3d6   :  { %912 = vrot.lane.b32.xlu0 %v911_v7, %s986_s5  ;;  %902 = vrot.lane.b32.xlu1 %v911_v7, %s987_s6 }
 0x3d7   :  { %897 = vrot.lane.b32.xlu2 %v911_v7, %s988_s14 }
 0x3de   :  { %927 = vrot.lane.b32.xlu0 %v911_v7, %s989_s15  ;;  %917 = vrot.lane.b32.xlu1 %v911_v7, %s990_s16 }
 0x3df   :  { %907 = vrot.lane.b32.xlu2 %v911_v7, %s991_s0 }
 0x3e6   :  { %942 = vrot.lane.b32.xlu0 %v911_v7, %s992_s17  ;;  %932 = vrot.lane.b32.xlu1 %v911_v7, %s993_s18 }
 0x3e7   :  { %922 = vrot.lane.b32.xlu2 %v911_v7, %s981_s22 }
 0x3ee   :  { %957 = vrot.lane.b32.xlu0 %v911_v7, %s994_s19  ;;  %947 = vrot.lane.b32.xlu1 %v911_v7, %s995_s20 }
 0x3ef   :  { %937 = vrot.lane.b32.xlu2 %v911_v7, %s983_s23 }
 0x3f6   :  { %962 = vrot.lane.b32.xlu1 %v911_v7, %s996_s1 }
 0x3f7   :  { %952 = vrot.lane.b32.xlu2 %v911_v7, %s997_s21 }
 0x3ff   :  { %967 = vrot.lane.b32.xlu2 %v911_v7, %s982_s2 }
 0x431   :  { %v898_v9 = vpop.permute.xlu2 %897 }
 0x432   :  { %v900_v10 = vunpack.i.h.bf16 %v898_v9  ;;  %v899_v11 = vunpack.i.l.bf16 %v898_v9 }
 0x434   :  { %v609_v12 = vpack.c.bf16 %v900_v10, %v899_v11  ;;  %v621_v10 = vunpack.c.h.b16 %v618_v56 }
 0x436   :  { %626 = vmatpush.bf16.msrb.mxu3 %v609_v12  ;;  %v623_v12 = vpack.c.b16 %v621_v10, %v621_v10 }
 0x439   :  { %v908_v13 = vpop.permute.xlu2 %907 }
 0x43a   :  { %v910_v14 = vunpack.i.h.bf16 %v908_v13  ;;  %v909_v15 = vunpack.i.l.bf16 %v908_v13 }
 0x43c   :  { %v617_v16 = vpack.c.bf16 %v910_v14, %v909_v15 }
 0x43e   :  { %639 = vmatpush.bf16.msrb.mxu0 %v617_v16 }
 0x441   :  { %v923_v17 = vpop.permute.xlu2 %922 }
 0x442   :  { %v925_v25 = vunpack.i.h.bf16 %v923_v17  ;;  %v924_v26 = vunpack.i.l.bf16 %v923_v17 }
 0x444   :  { %v606_v35 = vpack.c.bf16 %v925_v25, %v924_v26 }
 0x448   :  { %v913_v18 = vpop.permute.xlu0 %912  ;;  %v903_v19 = vpop.permute.xlu1 %902 }
 0x449   :  { %v905_v20 = vunpack.i.h.bf16 %v903_v19  ;;  %v904_v21 = vunpack.i.l.bf16 %v903_v19  ;;  %v915_v22 = vunpack.i.h.bf16 %v913_v18  ;;  %v914_v23 = vunpack.i.l.bf16 %v913_v18  ;;  %v938_v32 = vpop.permute.xlu2 %937 }
 0x44a   :  { %v940_v37 = vunpack.i.h.bf16 %v938_v32  ;;  %v939_v38 = vunpack.i.l.bf16 %v938_v32 }
 0x44b   :  { %v608_v24 = vpack.c.bf16 %v905_v20, %v904_v21  ;;  %v607_v27 = vpack.c.bf16 %v915_v22, %v914_v23  ;;  %v674_v22 = vlaneseq }
 0x44c   :  { %v614_v47 = vpack.c.bf16 %v940_v37, %v939_v38 }
 0x44d   :  { %627 = vmatpush.bf16.msrb.mxu3 %v608_v24 }
 0x450   :  { %v928_v28 = vpop.permute.xlu0 %927  ;;  %v918_v29 = vpop.permute.xlu1 %917 }
 0x451   :  { %v920_v30 = vunpack.i.h.bf16 %v918_v29  ;;  %v919_v31 = vunpack.i.l.bf16 %v918_v29  ;;  %628 = vmatpush.bf16.msrb.mxu3 %v607_v27  ;;  %v930_v33 = vunpack.i.h.bf16 %v928_v28  ;;  %v929_v34 = vunpack.i.l.bf16 %v928_v28  ;;  %v953_v48 = vpop.permute.xlu2 %952 }
 0x452   :  { %v955_v49 = vunpack.i.h.bf16 %v953_v48  ;;  %v954_v50 = vunpack.i.l.bf16 %v953_v48  ;;  %v675_v27 = vshrl.u32 %v674_v22, 7 }
 0x453   :  { %v616_v36 = vpack.c.bf16 %v920_v30, %v919_v31  ;;  %v615_v39 = vpack.c.bf16 %v930_v33, %v929_v34 }
 0x454   :  { %v603_v59 = vpack.c.bf16 %v955_v49, %v954_v50  ;;  %vm676_vm1 = vcmp.eq.s32.totalorder %v675_v27, 0 }
 0x455   :  { %629 = vmatpush.bf16.msrb.mxu3 %v606_v35  ;;  %640 = vmatpush.bf16.msrb.mxu0 %v616_v36 }
 0x458   :  { %v943_v40 = vpop.permute.xlu0 %942  ;;  %v933_v41 = vpop.permute.xlu1 %932 }
 0x459   :  { %v935_v42 = vunpack.i.h.bf16 %v933_v41  ;;  %v934_v43 = vunpack.i.l.bf16 %v933_v41  ;;  %641 = vmatpush.bf16.msrb.mxu0 %v615_v39  ;;  %v945_v44 = vunpack.i.h.bf16 %v943_v40  ;;  %v944_v45 = vunpack.i.l.bf16 %v943_v40  ;;  %v968_v63 = vpop.permute.xlu2 %967 }
 0x45a   :  { %v970_v4 = vunpack.i.h.bf16 %v968_v63  ;;  %v969_v7 = vunpack.i.l.bf16 %v968_v63 }
 0x45b   :  { %v605_v46 = vpack.c.bf16 %v935_v42, %v934_v43  ;;  %v604_v51 = vpack.c.bf16 %v945_v44, %v944_v45 }
 0x45c   :  { %v610_v11 = vpack.c.bf16 %v970_v4, %v969_v7 }
 0x45d   :  { %630 = vmatpush.bf16.msrb.mxu3 %v605_v46  ;;  %642 = vmatpush.bf16.msrb.mxu0 %v614_v47 }
 0x460   :  { %v958_v52 = vpop.permute.xlu0 %957  ;;  %v948_v53 = vpop.permute.xlu1 %947 }
 0x461   :  { %v950_v54 = vunpack.i.h.bf16 %v948_v53  ;;  %v949_v55 = vunpack.i.l.bf16 %v948_v53  ;;  %631 = vmatpush.bf16.msrb.mxu3 %v604_v51  ;;  %v960_v57 = vunpack.i.h.bf16 %v958_v52  ;;  %v959_v58 = vunpack.i.l.bf16 %v958_v52 }
 0x463   :  { %v613_v60 = vpack.c.bf16 %v950_v54, %v949_v55  ;;  %v612_v62 = vpack.c.bf16 %v960_v57, %v959_v58 }
 0x465   :  { %632 = vmatpush.bf16.msrb.mxu3 %v603_v59  ;;  %643 = vmatpush.bf16.msrb.mxu0 %v613_v60 }
 0x468   :  { %v963_v0 = vpop.permute.xlu1 %962 }
 0x469   :  { %v965_v2 = vunpack.i.h.bf16 %v963_v0  ;;  %v964_v3 = vunpack.i.l.bf16 %v963_v0  ;;  %633 = vmatpush.bf16.msrb.mxu3 %v602_v8  ;;  %644 = vmatpush.bf16.msrb.mxu0 %v612_v62 }
 0x46b   :  { %v611_v9 = vpack.c.bf16 %v965_v2, %v964_v3 }
 0x46c   :  { %634 = vmatmul.bf16.vlgmr.msrb.gmra.mxu3 %v622_v1 }
 0x46d   :  { %645 = vmatpush.bf16.msrb.mxu0 %v611_v9 }
 0x471   :  { %646 = vmatpush.bf16.msrb.mxu0 %v610_v11 }
 0x474   :  { %647 = vmatmul.bf16.vlgmr.msrb.gmra.mxu0 %v623_v12 }
 0x4ef   :  { %v635_v13 = vpop.f32.mrf.mxu3 }
 0x4f1   :  { %v648_v14 = vpop.f32.mrf.mxu0 }
 0x4f2   :  { %v649_v15 = vadd.f32 %v648_v14, %v635_v13 }
 0x4f4   :  { %v652_v16 = vand.u32 2147483647, %v649_v15  ;;  %vm656_vm15 = vcmp.ge.f32.partialorder %v649_v15, 0.0 }
 0x4f6   :  { %v653_v17 = vsub.f32 0.0, %v652_v16 }
 0x4f7   :  { %v637_v18 = vpop.f32.mrf.mxu3 }
 0x4f8   :  { %v654_v19 = vmul.f32 1.442695, %v653_v17 }
 0x4f9   :  { %v650_v5 = vpop.f32.mrf.mxu0 }
 0x4fa   :  { %977 = vpow2.f32 %v654_v19 }
 0x500   :  { %v978_v6 = vpop.eup %977 }
 0x501   :  { %v658_v8 = vadd.f32 1.0, %v978_v6  ;;  %v657_v31 = vsel %vm656_vm15, 1.0, %v978_v6 }
 0x503   :  { %979 = vrcp.f32 %v658_v8  ;;  %v670_v24 = vand.u32 2147483648, %v658_v8  ;;  %v668_v26 = vand.u32 2147483647, %v658_v8  ;;  %vm664_vm13 = vweird.f32 %v658_v8 }
 0x505   :  { %v671_v29 = vor.u32 1.1754944e-38, %v670_v24  ;;  %vm669_vm0 = vcmp.eq.f32.partialorder %v668_v26, 8.507059e+37 }
 0x509   :  { %v980_v20 = vpop.eup %979 }
 0x50a   :  { %v660_v21 = vmul.f32 %v980_v20, %v658_v8  ;;  %vm665_vm12 = vweird.f32 %v980_v20 }
 0x50b   :  { %vm666_vm14 = vmor %vm664_vm13, %vm665_vm12 }
 0x50c   :  { %v661_v23 = vsub.f32 1.0, %v660_v21 }
 0x50e   :  { %v662_v25 = vmul.f32 %v980_v20, %v661_v23 }
 0x510   :  { %v663_v28 = vadd.f32 %v980_v20, %v662_v25 }
 0x512   :  { %v667_v30 = vsel %vm666_vm14, %v980_v20, %v663_v28 }
 0x513   :  { %v672_v32 = vsel %vm669_vm0, %v671_v29, %v667_v30 }
 0x514   :  { %v673_v33 = vmul.f32 %v672_v32, %v657_v31 }
 0x516   :  { %v677_v34 = vsel %vm676_vm1, %v673_v33, %v649_v15 }
 0x517   :  { %679 = vst.msk [vmem:[%s1313_s8] sm:$0x3f] %vm678_vm2, %v677_v34 }

</bundles_post_ra>
